<compile_context>
chip_gen: v7x
topology: tpu7x:2x2x1
jax: 0.10.0
libtpu: 0.0.40
codegen_flags: <defaults>
</compile_context>

<pallas_src>
from functools import partial

import jax
import jax.numpy as jnp
from jax.experimental import pallas as pl
from jax.experimental.pallas import tpu as pltpu

# ----------------------------- configuration ------------------------------
N_MODES = 3                      # het_mode == 'mix' -> 3 submodels
INPUT_DIM = 32
HIDDEN_DIM = 32
OUTPUT_DIM = 8
MIX_DIM = N_MODES * HIDDEN_DIM   # 96 real hidden lanes
MIX_PAD = 128                    # hidden lanes padded to a dense vreg width
N_NODES = 256
LN_EPS = 1e-5
_INV_SQRT2 = 0.7071067811865476


# ------------------------------ Pallas kernel ------------------------------
def _mix_kernel(x_ref, w_in_ref, b_in_ref, ln_mask_ref, w_fused_ref,
                b_fused_ref, o_ref):
    """All three submodels + mixing linear, fused, one row-block per grid step.

    x_ref       : (rb, INPUT_DIM)       f32
    w_in_ref    : (INPUT_DIM, MIX_PAD)  bf16  3 input_linear weights, pre-T, lane-concat, 0-padded
    b_in_ref    : (1, MIX_PAD)          f32   0-padded
    ln_mask_ref : (MIX_PAD, MIX_PAD)    bf16  block-diag averaging matrix (1/32 blocks), 0-padded
    w_fused_ref : (MIX_PAD, OUTPUT_DIM) bf16  gamma*W_out[m] folded through W_mix, 0-padded rows
    b_fused_ref : (1, OUTPUT_DIM)       f32   beta/b_out folded through W_mix + b_mix
    o_ref       : (rb, OUTPUT_DIM)      f32
    """
    # Fused input_linear for all 3 submodels: one MXU call, bf16 operands,
    # f32 accumulation.  Padded lanes (96:128) stay exactly zero.
    x = x_ref[...].astype(jnp.bfloat16)
    h = jnp.dot(x, w_in_ref[...], preferred_element_type=jnp.float32)
    h = h + b_in_ref[...]

    # nn.GELU (exact erf form — matches the PyTorch nn.GELU() default).
    # Optional v5e micro-opt: tanh-approx GELU would move work to the EUP,
    # skipped here to preserve numerical parity with PyTorch.
    h = 0.5 * h * (1.0 + jax.lax.erf(h * _INV_SQRT2))

    # Per-submodel LayerNorm over each contiguous 32-lane group.  Group mean
    # and centered variance are computed with a block-diagonal bf16 averaging
    # matmul, which both reduces and re-broadcasts within each group — no
    # lane-crossing reshape / slice / concat, everything stays lane-parallel.
    m = ln_mask_ref[...]                                          # bf16
    mu = jnp.dot(h.astype(jnp.bfloat16), m,
                 preferred_element_type=jnp.float32)
    c = h - mu                                                    # centered, f32
    var = jnp.dot((c * c).astype(jnp.bfloat16), m,
                  preferred_element_type=jnp.float32)
    hn = c * jax.lax.rsqrt(var + LN_EPS)
    # padded lanes: c == 0 -> hn == 0 regardless of rsqrt(eps)

    # LayerNorm affine + output_linear (x3) + torch.cat + mixing linear,
    # algebraically folded host-side into ONE (MIX_PAD, OUTPUT_DIM) matmul.
    out = jnp.dot(hn.astype(jnp.bfloat16), w_fused_ref[...],
                  preferred_element_type=jnp.float32)
    o_ref[...] = (out + b_fused_ref[...]).astype(o_ref.dtype)


# ------------------------------ host wrapper -------------------------------
def default_row_blocks(n):
    """2 row blocks only on v7x (2 TensorCores/chip) so the 'parallel' grid
    axis shards rows across both cores; 1 elsewhere (extra grid steps only
    add ~0.35 us/step of overhead on single-TC v5e/v6e)."""
    try:
        kind = jax.devices()[0].device_kind.lower()
    except Exception:
        return 1
    if ("v7" in kind) and n % 2 == 0 and (n // 2) % 8 == 0:
        return 2
    return 1


@partial(jax.jit, static_argnames=("row_blocks",))
def mix_model_forward(x, w_in_cat, b_in_cat, ln_mask, w_fused, b_fused, *,
                      row_blocks=1):
    n = x.shape[0]
    assert n % row_blocks == 0
    rb = n // row_blocks

    # weights / biases / ln_mask are replicated across row blocks
    rep = lambda a: pl.BlockSpec(a.shape, lambda i: (0, 0))

    flops = 2 * n * (INPUT_DIM * MIX_PAD            # fused input matmul
                     + 2 * MIX_PAD * MIX_PAD        # LN stats matmuls
                     + MIX_PAD * OUTPUT_DIM)        # fused output matmul
    transcendentals = 2 * n * MIX_PAD               # erf + rsqrt
    bytes_accessed = (x.size * 4 + w_in_cat.size * 2 + b_in_cat.size * 4 +
                      ln_mask.size * 2 + w_fused.size * 2 + b_fused.size * 4 +
                      n * OUTPUT_DIM * 4)

    # TODO(synk): if N grows beyond a few thousand rows, re-derive the row
    # tile from the per-generation VMEM budget (halve on v7x) instead of one
    # block per core.
    return pl.pallas_call(
        _mix_kernel,
        out_shape=jax.ShapeDtypeStruct((n, OUTPUT_DIM), jnp.float32),
        grid_spec=pltpu.PrefetchScalarGridSpec(
            num_scalar_prefetch=0,
            grid=(row_blocks,),
            in_specs=[pl.BlockSpec((rb, INPUT_DIM), lambda i: (i, 0)),
                      rep(w_in_cat), rep(b_in_cat), rep(ln_mask),
                      rep(w_fused), rep(b_fused)],
            out_specs=pl.BlockSpec((rb, OUTPUT_DIM), lambda i: (i, 0)),
        ),
        compiler_params=pltpu.CompilerParams(
            dimension_semantics=("parallel",)),
        cost_estimate=pl.CostEstimate(
            flops=flops, transcendentals=transcendentals,
            bytes_accessed=bytes_accessed),
    )(x, w_in_cat, b_in_cat, ln_mask, w_fused, b_fused)


# ------------------------ deterministic param init -------------------------
def _linear_params(key, fan_in, fan_out):
    """nn.Linear default init: U(-1/sqrt(fan_in), 1/sqrt(fan_in)); PyTorch layout."""
    kw, kb = jax.random.split(key)
    bound = 1.0 / jnp.sqrt(jnp.float32(fan_in))
    w = jax.random.uniform(kw, (fan_out, fan_in), jnp.float32, -bound, bound)
    b = jax.random.uniform(kb, (fan_out,), jnp.float32, -bound, bound)
    return w, b


def make_params(key):
    """Per-submodel parameters in PyTorch (out_features, in_features) layout.

    LayerNorm affine params are included (randomized here to exercise the
    host-side folding; a freshly-initialized PyTorch module has gamma=1,
    beta=0, which is a special case)."""
    keys = jax.random.split(key, 3 * N_MODES + 1)
    w_in, b_in, w_out, b_out, ln_g, ln_b = [], [], [], [], [], []
    for m in range(N_MODES):
        wi, bi = _linear_params(keys[3 * m], INPUT_DIM, HIDDEN_DIM)
        wo, bo = _linear_params(keys[3 * m + 1], HIDDEN_DIM, OUTPUT_DIM)
        kg, kb = jax.random.split(keys[3 * m + 2])
        g = 1.0 + 0.1 * jax.random.normal(kg, (HIDDEN_DIM,), jnp.float32)
        b = 0.1 * jax.random.normal(kb, (HIDDEN_DIM,), jnp.float32)
        w_in.append(wi); b_in.append(bi); w_out.append(wo); b_out.append(bo)
        ln_g.append(g); ln_b.append(b)
    w_mix, b_mix = _linear_params(keys[-1], N_MODES * OUTPUT_DIM, OUTPUT_DIM)
    return (jnp.stack(w_in), jnp.stack(b_in), jnp.stack(w_out),
            jnp.stack(b_out), w_mix, b_mix, jnp.stack(ln_g), jnp.stack(ln_b))


def fuse_params(params):
    """Host-side folding of the 3 submodels + LN affine + mix linear into
    kernel operands, padded to a dense 128-lane hidden dim."""
    w_in, b_in, w_out, b_out, w_mix, b_mix, ln_g, ln_b = params

    w_in_cat = jnp.zeros((INPUT_DIM, MIX_PAD), jnp.float32)
    b_in_cat = jnp.zeros((1, MIX_PAD), jnp.float32)
    w_fused = jnp.zeros((MIX_PAD, OUTPUT_DIM), jnp.float32)
    ln_mask = jnp.zeros((MIX_PAD, MIX_PAD), jnp.float32)
    blk = jnp.full((HIDDEN_DIM, HIDDEN_DIM), 1.0 / HIDDEN_DIM, jnp.float32)
    b_fused = b_mix

    for m in range(N_MODES):
        lo = m * HIDDEN_DIM
        # fused input_linear (pre-transposed, lane-concatenated)
        w_in_cat = w_in_cat.at[:, lo:lo + HIDDEN_DIM].set(w_in[m].T)
        b_in_cat = b_in_cat.at[0, lo:lo + HIDDEN_DIM].set(b_in[m])
        # block-diagonal per-group averaging matrix (padded group stays zero)
        ln_mask = ln_mask.at[lo:lo + HIDDEN_DIM, lo:lo + HIDDEN_DIM].set(blk)
        # fold LN affine + output_linear + mix linear (exact algebra, f32):
        #   out_m = (hn_m * gamma_m + beta_m) @ W_out[m]^T + b_out[m]
        #   out  += out_m @ W_mix[:, m*8:(m+1)*8]^T
        wmix_m = w_mix[:, m * OUTPUT_DIM:(m + 1) * OUTPUT_DIM]        # (OUT, OUT)
        w_block = (ln_g[m][:, None] * w_out[m].T) @ wmix_m.T          # (HIDDEN, OUT)
        w_fused = w_fused.at[lo:lo + HIDDEN_DIM, :].set(w_block)
        b_fused = b_fused + (ln_b[m] @ w_out[m].T + b_out[m]) @ wmix_m.T

    b_fused = b_fused.reshape(1, OUTPUT_DIM)
    # bf16 MXU operands (1/32 is exactly representable in bf16)
    return (w_in_cat.astype(jnp.bfloat16), b_in_cat,
            ln_mask.astype(jnp.bfloat16),
            w_fused.astype(jnp.bfloat16), b_fused)


# ------------------------------ pure-JAX refs -------------------------------
def reference_forward_f32(x, params):
    """f32 mirror of MixModel.forward (het_mode='mix', num_layers == 0)."""
    w_in, b_in, w_out, b_out, w_mix, b_mix, ln_g, ln_b = params
    outs = []
    for m in range(N_MODES):
        h = x @ w_in[m].T + b_in[m]
        h = 0.5 * h * (1.0 + jax.lax.erf(h * _INV_SQRT2))
        mu = jnp.mean(h, axis=-1, keepdims=True)
        var = jnp.mean((h - mu) ** 2, axis=-1, keepdims=True)
        h = (h - mu) * jax.lax.rsqrt(var + LN_EPS) * ln_g[m] + ln_b[m]
        outs.append(h @ w_out[m].T + b_out[m])
    cat = jnp.concatenate(outs, axis=-1)
    return cat @ w_mix.T + b_mix


def reference_forward_matched(x, w_in_cat, b_in_cat, ln_mask, w_fused, b_fused):
    """Same fused / padded / bf16-operand math as the kernel, in plain XLA."""
    h = jnp.dot(x.astype(jnp.bfloat16), w_in_cat,
                preferred_element_type=jnp.float32) + b_in_cat
    h = 0.5 * h * (1.0 + jax.lax.erf(h * _INV_SQRT2))
    mu = jnp.dot(h.astype(jnp.bfloat16), ln_mask,
                 preferred_element_type=jnp.float32)
    c = h - mu
    var = jnp.dot((c * c).astype(jnp.bfloat16), ln_mask,
                  preferred_element_type=jnp.float32)
    hn = c * jax.lax.rsqrt(var + LN_EPS)
    return jnp.dot(hn.astype(jnp.bfloat16), w_fused,
                   preferred_element_type=jnp.float32) + b_fused


# ---------------------------------- main ------------------------------------
if __name__ == "__main__":
    key = jax.random.PRNGKey(0)
    k_x, k_p = jax.random.split(key)

    x = jax.random.normal(k_x, (N_NODES, INPUT_DIM), jnp.float32)
    params = make_params(k_p)
    fused = fuse_params(params)

    nb = default_row_blocks(N_NODES)   # 2 on v7x (megacore), 1 on v5e/v6e
    out = mix_model_forward(x, *fused, row_blocks=nb)
    out = jax.block_until_ready(out)
    assert out.shape == (N_NODES, OUTPUT_DIM)

    # tight check against a plain-XLA implementation of the exact same
    # fused / padded / bf16 math
    ref_matched = reference_forward_matched(x, *fused)
    assert jnp.allclose(out, ref_matched, rtol=3e-3, atol=3e-3), \
        "mismatch vs matched (fused/bf16) reference"

    # loose check against the per-submodel pure-f32 reference (bf16 MXU
    # operands introduce ~0.5% relative error, well within this tolerance)
    ref_f32 = reference_forward_f32(x, params)
    assert jnp.allclose(out, ref_f32, rtol=5e-2, atol=5e-2), \
        "mismatch vs f32 reference"

    print("KERNEL_OK")
</pallas_src>

<mosaic_0001>
module attributes {stable_mosaic.version = 11 : i64} {
  func.func @_mix_kernel(%arg0: i32, %arg1: memref<256x32xf32, #tpu.memory_space<vmem>>, %arg2: memref<32x128xbf16, #tpu.memory_space<vmem>>, %arg3: memref<1x128xf32, #tpu.memory_space<vmem>>, %arg4: memref<128x128xbf16, #tpu.memory_space<vmem>>, %arg5: memref<128x8xbf16, #tpu.memory_space<vmem>>, %arg6: memref<1x8xf32, #tpu.memory_space<vmem>>, %arg7: memref<256x8xf32, #tpu.memory_space<vmem>>) attributes {dimension_semantics = [#tpu.dimension_semantics<parallel>], iteration_bounds = array<i64: 1>, scalar_prefetch = 0 : i64, scratch_operands = 0 : i64, tpu.core_type = #tpu.core_type<tc>, window_params = [{transform_indices = @transform_0, window_bounds = array<i64: 256, 32>}, {pipeline_mode = #tpu.pipeline_mode<synchronous>, transform_indices = @transform_1, window_bounds = array<i64: 32, 128>}, {pipeline_mode = #tpu.pipeline_mode<synchronous>, transform_indices = @transform_2, window_bounds = array<i64: 1, 128>}, {pipeline_mode = #tpu.pipeline_mode<synchronous>, transform_indices = @transform_3, window_bounds = array<i64: 128, 128>}, {pipeline_mode = #tpu.pipeline_mode<synchronous>, transform_indices = @transform_4, window_bounds = array<i64: 128, 8>}, {pipeline_mode = #tpu.pipeline_mode<synchronous>, transform_indices = @transform_5, window_bounds = array<i64: 1, 8>}, {transform_indices = @transform_6, window_bounds = array<i64: 256, 8>}]} {
    %c0 = arith.constant 0 : index
    %c0_0 = arith.constant 0 : index
    %0 = vector.load %arg1[%c0, %c0_0] : memref<256x32xf32, #tpu.memory_space<vmem>>, vector<256x32xf32>
    %1 = arith.truncf %0 : vector<256x32xf32> to vector<256x32xbf16>
    %c0_1 = arith.constant 0 : index
    %c0_2 = arith.constant 0 : index
    %2 = vector.load %arg2[%c0_1, %c0_2] : memref<32x128xbf16, #tpu.memory_space<vmem>>, vector<32x128xbf16>
    %cst = arith.constant dense<0.000000e+00> : vector<256x128xf32>
    %3 = tpu.matmul %1, %2, %cst {dimension_numbers = #tpu.dot_dimension_numbers<[1], [0], [0], [1], [0, 0, 1, 1], [], []>} : vector<256x32xbf16>, vector<32x128xbf16>, vector<256x128xf32> -> vector<256x128xf32>
    %c0_3 = arith.constant 0 : index
    %c0_4 = arith.constant 0 : index
    %4 = vector.load %arg3[%c0_3, %c0_4] : memref<1x128xf32, #tpu.memory_space<vmem>>, vector<1x128xf32>
    %5 = vector.broadcast %4 : vector<1x128xf32> to vector<256x128xf32>
    %6 = arith.addf %3, %5 : vector<256x128xf32>
    %cst_5 = arith.constant 5.000000e-01 : f32
    %7 = vector.broadcast %cst_5 : f32 to vector<256x128xf32>
    %8 = arith.mulf %7, %6 : vector<256x128xf32>
    %cst_6 = arith.constant 0.707106769 : f32
    %9 = vector.broadcast %cst_6 : f32 to vector<256x128xf32>
    %10 = arith.mulf %6, %9 : vector<256x128xf32>
    %11 = math.erf %10 : vector<256x128xf32>
    %cst_7 = arith.constant 1.000000e+00 : f32
    %12 = vector.broadcast %cst_7 : f32 to vector<256x128xf32>
    %13 = arith.addf %12, %11 : vector<256x128xf32>
    %14 = arith.mulf %8, %13 : vector<256x128xf32>
    %c0_8 = arith.constant 0 : index
    %c0_9 = arith.constant 0 : index
    %15 = vector.load %arg4[%c0_8, %c0_9] : memref<128x128xbf16, #tpu.memory_space<vmem>>, vector<128x128xbf16>
    %16 = arith.truncf %14 : vector<256x128xf32> to vector<256x128xbf16>
    %cst_10 = arith.constant dense<0.000000e+00> : vector<256x128xf32>
    %17 = tpu.matmul %16, %15, %cst_10 {dimension_numbers = #tpu.dot_dimension_numbers<[1], [0], [0], [1], [0, 0, 1, 1], [], []>} : vector<256x128xbf16>, vector<128x128xbf16>, vector<256x128xf32> -> vector<256x128xf32>
    %18 = arith.subf %14, %17 : vector<256x128xf32>
    %19 = arith.mulf %18, %18 : vector<256x128xf32>
    %20 = arith.truncf %19 : vector<256x128xf32> to vector<256x128xbf16>
    %cst_11 = arith.constant dense<0.000000e+00> : vector<256x128xf32>
    %21 = tpu.matmul %20, %15, %cst_11 {dimension_numbers = #tpu.dot_dimension_numbers<[1], [0], [0], [1], [0, 0, 1, 1], [], []>} : vector<256x128xbf16>, vector<128x128xbf16>, vector<256x128xf32> -> vector<256x128xf32>
    %cst_12 = arith.constant 9.99999974E-6 : f32
    %22 = vector.broadcast %cst_12 : f32 to vector<256x128xf32>
    %23 = arith.addf %21, %22 : vector<256x128xf32>
    %24 = math.rsqrt %23 : vector<256x128xf32>
    %25 = arith.mulf %18, %24 : vector<256x128xf32>
    %26 = arith.truncf %25 : vector<256x128xf32> to vector<256x128xbf16>
    %c0_13 = arith.constant 0 : index
    %c0_14 = arith.constant 0 : index
    %27 = vector.load %arg5[%c0_13, %c0_14] : memref<128x8xbf16, #tpu.memory_space<vmem>>, vector<128x8xbf16>
    %cst_15 = arith.constant dense<0.000000e+00> : vector<256x8xf32>
    %28 = tpu.matmul %26, %27, %cst_15 {dimension_numbers = #tpu.dot_dimension_numbers<[1], [0], [0], [1], [0, 0, 1, 1], [], []>} : vector<256x128xbf16>, vector<128x8xbf16>, vector<256x8xf32> -> vector<256x8xf32>
    %c0_16 = arith.constant 0 : index
    %c0_17 = arith.constant 0 : index
    %29 = vector.load %arg6[%c0_16, %c0_17] : memref<1x8xf32, #tpu.memory_space<vmem>>, vector<1x8xf32>
    %30 = vector.broadcast %29 : vector<1x8xf32> to vector<256x8xf32>
    %31 = arith.addf %28, %30 : vector<256x8xf32>
    %c0_18 = arith.constant 0 : index
    %c0_19 = arith.constant 0 : index
    %32 = vector.load %arg7[%c0_18, %c0_19] : memref<256x8xf32, #tpu.memory_space<vmem>>, vector<256x8xf32>
    tpu.vector_store %arg7[%c0_18, %c0_19], %31 {strides = array<i32>} : memref<256x8xf32, #tpu.memory_space<vmem>>, vector<256x8xf32>,
    return
  }
  func.func @transform_0(%arg0: i32) -> (i32, i32) {
    %c0_i32 = arith.constant 0 : i32
    %c0_i32_0 = arith.constant 0 : i32
    return %arg0, %c0_i32 : i32, i32
  }
  func.func @transform_1(%arg0: i32) -> (i32, i32) {
    %c0_i32 = arith.constant 0 : i32
    %c0_i32_0 = arith.constant 0 : i32
    %c0_i32_1 = arith.constant 0 : i32
    return %c0_i32, %c0_i32_0 : i32, i32
  }
  func.func @transform_2(%arg0: i32) -> (i32, i32) {
    %c0_i32 = arith.constant 0 : i32
    %c0_i32_0 = arith.constant 0 : i32
    %c0_i32_1 = arith.constant 0 : i32
    return %c0_i32, %c0_i32_0 : i32, i32
  }
  func.func @transform_3(%arg0: i32) -> (i32, i32) {
    %c0_i32 = arith.constant 0 : i32
    %c0_i32_0 = arith.constant 0 : i32
    %c0_i32_1 = arith.constant 0 : i32
    return %c0_i32, %c0_i32_0 : i32, i32
  }
  func.func @transform_4(%arg0: i32) -> (i32, i32) {
    %c0_i32 = arith.constant 0 : i32
    %c0_i32_0 = arith.constant 0 : i32
    %c0_i32_1 = arith.constant 0 : i32
    return %c0_i32, %c0_i32_0 : i32, i32
  }
  func.func @transform_5(%arg0: i32) -> (i32, i32) {
    %c0_i32 = arith.constant 0 : i32
    %c0_i32_0 = arith.constant 0 : i32
    %c0_i32_1 = arith.constant 0 : i32
    return %c0_i32, %c0_i32_0 : i32, i32
  }
  func.func @transform_6(%arg0: i32) -> (i32, i32) {
    %c0_i32 = arith.constant 0 : i32
    %c0_i32_0 = arith.constant 0 : i32
    return %arg0, %c0_i32 : i32, i32
  }
}

</mosaic_0001>

<bundles_post_ra>
// kernel: mix_model_forward.1
= control target key start
LH: loop header
LB: loop body
LE: loop exit
PB: predicated region body
PF: predicated region fallthrough
CT: control target
= control target key end

     0   :  { %vm95_vm0 = vcmask 261120   ;;  %vm1259_vm1 = vcmask 64512   ;;  %s2525_s1 = inlined_call_operand.vmem [shape: bf16[32,128], index: 1, kind: input, shape index: {}]   ;;  %s2526_s0 = inlined_call_operand.vmem [shape: f32[256,32], index: 0, kind: input, shape index: {}]   ;;  %s2527_s3 = inlined_call_operand.vmem [shape: bf16[128,128], index: 3, kind: input, shape index: {}]   ;;  %s2528_s2 = inlined_call_operand.vmem [shape: f32[1,128], index: 2, kind: input, shape index: {}]   ;;  %s2529_s4 = inlined_call_operand.vmem [shape: bf16[128,8], index: 4, kind: input, shape index: {}]   ;;  %s2530_s5 = inlined_call_operand.vmem [shape: f32[1,8], index: 5, kind: input, shape index: {}]   ;;  %s2531_s6 = inlined_call_operand.vmem [shape: f32[256,8], index: 6, kind: output, shape index: {}]  }
   0x1   :  { %v1618_v0 = vld [vmem:[%s2525_s1] sm:$0xff]   ;;  %v1619_v1 = vld [vmem:[%s2525_s1 + $0x8] sm:$0xff]   ;;  %v26_v5 = vld [vmem:[%s2526_s0 + $0x10] sm:$0xff] }
   0x2   :  { %1422 = vmatprep.subr.bf16.mxu0 %v1618_v0  ;;  %v24_v2 = vld [vmem:[%s2526_s0] sm:$0xff]  ;;  %v25_v3 = vld [vmem:[%s2526_s0 + $0x8] sm:$0xff]  ;;  %v27_v6 = vld [vmem:[%s2526_s0 + $0x18] sm:$0xff] }
   0x3   :  { %1423 = vmatpush3.bf16.msra.mxu0 %v1618_v0  ;;  %v56_v4 = vpack.c.bf16 %v25_v3, %v24_v2  ;;  %v28_v7 = vld [vmem:[%s2526_s0 + $0x20] sm:$0xff]  ;;  %v29_v8 = vld [vmem:[%s2526_s0 + $0x28] sm:$0xff]  ;;  %v57_v9 = vpack.c.bf16 %v27_v6, %v26_v5  ;;  %v30_v11 = vld [vmem:[%s2526_s0 + $0x30] sm:$0xff] }
   0x4   :  { %1424 = vmatprep.subr.bf16.mxu0 %v1619_v1  ;;  %v58_v10 = vpack.c.bf16 %v29_v8, %v28_v7  ;;  %v31_v12 = vld [vmem:[%s2526_s0 + $0x38] sm:$0xff]  ;;  %v32_v13 = vld [vmem:[%s2526_s0 + $0x40] sm:$0xff]  ;;  %v33_v14 = vld [vmem:[%s2526_s0 + $0x48] sm:$0xff] }
   0x5   :  { %1426 = vmatprep.mubr.msk.bf16.mxu0 %vm95_vm0, %v56_v4  ;;  %v1620_v15 = vld [vmem:[%s2527_s3] sm:$0xff]   ;;  %v59_v16 = vpack.c.bf16 %v31_v12, %v30_v11  ;;  %v1621_v17 = vld [vmem:[%s2527_s3 + $0x8] sm:$0xff]   ;;  %v60_v18 = vpack.c.bf16 %v33_v14, %v32_v13  ;;  %v34_v19 = vld [vmem:[%s2526_s0 + $0x50] sm:$0xff] }
   0x6   :  { %1458 = vmatprep.subr.bf16.mxu1 %v1620_v15  ;;  %v35_v20 = vld [vmem:[%s2526_s0 + $0x58] sm:$0xff]  ;;  %v36_v21 = vld [vmem:[%s2526_s0 + $0x60] sm:$0xff]  ;;  %v37_v22 = vld [vmem:[%s2526_s0 + $0x68] sm:$0xff] }
   0x7   :  { %1425 = vmatpush3.bf16.msra.mxu0 %v1619_v1  ;;  %1459 = vmatpush3.bf16.msra.mxu1 %v1620_v15  ;;  %v61_v23 = vpack.c.bf16 %v35_v20, %v34_v19  ;;  %v62_v24 = vpack.c.bf16 %v37_v22, %v36_v21  ;;  %v38_v25 = vld [vmem:[%s2526_s0 + $0x70] sm:$0xff]  ;;  %v39_v26 = vld [vmem:[%s2526_s0 + $0x78] sm:$0xff]  ;;  %v40_v27 = vld [vmem:[%s2526_s0 + $0x80] sm:$0xff] }
   0x8   :  { %1506 = vmatprep.subr.bf16.mxu0 %v1620_v15  ;;  %1460 = vmatprep.subr.bf16.mxu1 %v1621_v17  ;;  %v41_v28 = vld [vmem:[%s2526_s0 + $0x88] sm:$0xff]  ;;  %v63_v29 = vpack.c.bf16 %v39_v26, %v38_v25  ;;  %v42_v31 = vld [vmem:[%s2526_s0 + $0x90] sm:$0xff]  ;;  %v43_v32 = vld [vmem:[%s2526_s0 + $0x98] sm:$0xff] }
   0x9   :  { %v64_v30 = vpack.c.bf16 %v41_v28, %v40_v27  ;;  %v44_v33 = vld [vmem:[%s2526_s0 + $0xa0] sm:$0xff]  ;;  %v45_v34 = vld [vmem:[%s2526_s0 + $0xa8] sm:$0xff]  ;;  %v65_v35 = vpack.c.bf16 %v43_v32, %v42_v31  ;;  %v46_v37 = vld [vmem:[%s2526_s0 + $0xb0] sm:$0xff] }
   0xa   :  { %1427 = vmatmul.mubr.msk.bf16.vlgmr.msra.gmra.mrb[0].mxu0 %vm95_vm0, %v57_v9  ;;  %v66_v36 = vpack.c.bf16 %v45_v34, %v44_v33  ;;  %v47_v38 = vld [vmem:[%s2526_s0 + $0xb8] sm:$0xff]  ;;  %v48_v39 = vld [vmem:[%s2526_s0 + $0xc0] sm:$0xff]  ;;  %v49_v40 = vld [vmem:[%s2526_s0 + $0xc8] sm:$0xff] }
   0xb   :  { %1430 = vmatprep.mubr.msk.bf16.mxu0 %vm95_vm0, %v58_v10  ;;  %1507 = vmatpush3.bf16.msra.mxu0 %v1620_v15  ;;  %v67_v41 = vpack.c.bf16 %v47_v38, %v46_v37  ;;  %v68_v42 = vpack.c.bf16 %v49_v40, %v48_v39  ;;  %v50_v43 = vld [vmem:[%s2526_s0 + $0xd0] sm:$0xff]  ;;  %v51_v44 = vld [vmem:[%s2526_s0 + $0xd8] sm:$0xff]  ;;  %v52_v45 = vld [vmem:[%s2526_s0 + $0xe0] sm:$0xff] }
   0xc   :  { %1508 = vmatprep.subr.bf16.mxu0 %v1621_v17  ;;  %1461 = vmatpush3.bf16.msra.mxu1 %v1621_v17  ;;  %v53_v46 = vld [vmem:[%s2526_s0 + $0xe8] sm:$0xff]  ;;  %v69_v47 = vpack.c.bf16 %v51_v44, %v50_v43  ;;  %v54_v49 = vld [vmem:[%s2526_s0 + $0xf0] sm:$0xff]  ;;  %v55_v50 = vld [vmem:[%s2526_s0 + $0xf8] sm:$0xff] }
   0xd   :  { %v70_v48 = vpack.c.bf16 %v53_v46, %v52_v45  ;;  %v71_v51 = vpack.c.bf16 %v55_v50, %v54_v49  ;;  %v1622_v52 = vld [vmem:[%s2527_s3 + $0x10] sm:$0xff]   ;;  %v1623_v53 = vld [vmem:[%s2527_s3 + $0x18] sm:$0xff]   ;;  %v1624_v54 = vld [vmem:[%s2527_s3 + $0x20] sm:$0xff]  }
   0xe   :  { %1462 = vmatprep.subr.bf16.mxu1 %v1622_v52  ;;  %v1625_v55 = vld [vmem:[%s2527_s3 + $0x28] sm:$0xff]   ;;  %v1626_v56 = vld [vmem:[%s2527_s3 + $0x30] sm:$0xff]   ;;  %v1627_v57 = vld [vmem:[%s2527_s3 + $0x38] sm:$0xff]  }
   0xf   :  { %1509 = vmatpush3.bf16.msra.mxu0 %v1621_v17  ;;  %v1944_v58 = vld [vmem:[%s2528_s2] ss:$0 sm:$0xff] }
  0x10   :  { %1510 = vmatprep.subr.bf16.mxu0 %v1622_v52  ;;  %1463 = vmatpush3.bf16.msra.mxu1 %v1622_v52 }
  0x11   :  { %1464 = vmatprep.subr.bf16.mxu1 %v1623_v53 }
  0x12   :  { %1431 = vmatmul.mubr.msk.bf16.gmra.mrb[4].mxu0 %vm95_vm0, %v59_v16 }
  0x13   :  { %1434 = vmatprep.mubr.msk.bf16.mxu0 %vm95_vm0, %v60_v18  ;;  %1511 = vmatpush3.bf16.msra.mxu0 %v1622_v52 }
  0x14   :  { %1512 = vmatprep.subr.bf16.mxu0 %v1623_v53  ;;  %1465 = vmatpush3.bf16.msra.mxu1 %v1623_v53 }
  0x15   :  { %1466 = vmatprep.subr.bf16.mxu1 %v1624_v54 }
  0x17   :  { %1513 = vmatpush3.bf16.msra.mxu0 %v1623_v53 }
  0x18   :  { %1514 = vmatprep.subr.bf16.mxu0 %v1624_v54  ;;  %1467 = vmatpush3.bf16.msra.mxu1 %v1624_v54 }
  0x19   :  { %1468 = vmatprep.subr.bf16.mxu1 %v1625_v55 }
  0x1a   :  { %1435 = vmatmul.mubr.msk.bf16.gmra.mrb[8].mxu0 %vm95_vm0, %v61_v23 }
  0x1b   :  { %1438 = vmatprep.mubr.msk.bf16.mxu0 %vm95_vm0, %v62_v24  ;;  %1515 = vmatpush3.bf16.msra.mxu0 %v1624_v54 }
  0x1c   :  { %1516 = vmatprep.subr.bf16.mxu0 %v1625_v55  ;;  %1469 = vmatpush3.bf16.msra.mxu1 %v1625_v55 }
  0x1d   :  { %1470 = vmatprep.subr.bf16.mxu1 %v1626_v56 }
  0x1f   :  { %1517 = vmatpush3.bf16.msra.mxu0 %v1625_v55 }
  0x20   :  { %1518 = vmatprep.subr.bf16.mxu0 %v1626_v56  ;;  %1471 = vmatpush3.bf16.msra.mxu1 %v1626_v56 }
  0x21   :  { %1472 = vmatprep.subr.bf16.mxu1 %v1627_v57 }
  0x22   :  { %1439 = vmatmul.mubr.msk.bf16.gmra.mrb[12].mxu0 %vm95_vm0, %v63_v29 }
  0x23   :  { %1442 = vmatprep.mubr.msk.bf16.mxu0 %vm95_vm0, %v64_v30  ;;  %1519 = vmatpush3.bf16.msra.mxu0 %v1626_v56 }
  0x24   :  { %1520 = vmatprep.subr.bf16.mxu0 %v1627_v57  ;;  %1473 = vmatpush3.bf16.msra.mxu1 %v1627_v57 }
  0x27   :  { %1521 = vmatpush3.bf16.msra.mxu0 %v1627_v57 }
  0x2a   :  { %1443 = vmatmul.mubr.msk.bf16.gmra.mrb[16].mxu0 %vm95_vm0, %v65_v35 }
  0x2b   :  { %1446 = vmatprep.mubr.msk.bf16.mxu0 %vm95_vm0, %v66_v36 }
  0x32   :  { %1447 = vmatmul.mubr.msk.bf16.gmra.mrb[20].mxu0 %vm95_vm0, %v67_v41 }
  0x33   :  { %1450 = vmatprep.mubr.msk.bf16.mxu0 %vm95_vm0, %v68_v42 }
  0x3a   :  { %1451 = vmatmul.mubr.msk.bf16.gmra.mrb[24].mxu0 %vm95_vm0, %v69_v47 }
  0x3b   :  { %1454 = vmatprep.mubr.msk.bf16.mxu0 %vm95_vm0, %v70_v48 }
  0x42   :  { %1455 = vmatmul.mubr.msk.bf16.gmra.mrb[28].mxu0 %vm95_vm0, %v71_v51 }
  0xdd   :  { %v1428_v59 = vpop.f32.mrb[0].mxu0 }
  0xde   :  { %v187_v60 = vadd.f32 %v1428_v59, %v1944_v58  ;;  %v178_v61 = vpop.f32.mrb[1].mxu0 }
  0xdf   :  { %v179_v62 = vadd.f32 %v1944_v58, %v178_v61  ;;  %v1429_v63 = vpop.f32.mrb[2].mxu0 }
  0xe0   :  { %v339_v0 = vmul.f32 0.70710677, %v187_v60  ;;  %v190_v1 = vadd.f32 %v1429_v63, %v1944_v58  ;;  %v181_v2 = vpop.f32.mrb[3].mxu0  ;;  %v307_v40 = vmul.f32 0.5, %v187_v60 }
  0xe1   :  { %v337_v3 = vmul.f32 0.70710677, %v179_v62  ;;  %v182_v4 = vadd.f32 %v1944_v58, %v181_v2  ;;  %v305_v36 = vmul.f32 0.5, %v179_v62 }
  0xe2   :  { %1636 = verf.f32 %v339_v0  ;;  %v340_v5 = vmul.f32 0.70710677, %v190_v1  ;;  %v308_v26 = vmul.f32 0.5, %v190_v1 }
  0xe3   :  { %1638 = verf.f32 %v337_v3  ;;  %v338_v6 = vmul.f32 0.70710677, %v182_v4  ;;  %v306_v37 = vmul.f32 0.5, %v182_v4 }
  0xe4   :  { %1640 = verf.f32 %v340_v5 }
  0xe5   :  { %1642 = verf.f32 %v338_v6  ;;  %v1432_v7 = vpop.f32.mrb[4].mxu0 }
  0xe6   :  { %v1951_v8 = vadd.f32 %v1432_v7, %v1944_v58  ;;  %v194_v9 = vpop.f32.mrb[5].mxu0 }
  0xe7   :  { %v195_v10 = vadd.f32 %v1944_v58, %v194_v9  ;;  %v1433_v11 = vpop.f32.mrb[6].mxu0 }
  0xe8   :  { %v343_v12 = vmul.f32 0.70710677, %v1951_v8  ;;  %v206_v13 = vadd.f32 %v1433_v11, %v1944_v58  ;;  %v197_v14 = vpop.f32.mrb[7].mxu0  ;;  %v311_v4 = vmul.f32 0.5, %v1951_v8 }
  0xe9   :  { %v341_v15 = vmul.f32 0.70710677, %v195_v10  ;;  %v198_v16 = vadd.f32 %v1944_v58, %v197_v14  ;;  %v309_v57 = vmul.f32 0.5, %v195_v10 }
  0xea   :  { %1644 = verf.f32 %v343_v12  ;;  %v344_v17 = vmul.f32 0.70710677, %v206_v13  ;;  %v312_v59 = vmul.f32 0.5, %v206_v13 }
  0xeb   :  { %1646 = verf.f32 %v341_v15  ;;  %v342_v18 = vmul.f32 0.70710677, %v198_v16  ;;  %v310_v0 = vmul.f32 0.5, %v198_v16 }
  0xec   :  { %v1637_v19 = vpop.eup %1636  ;;  %1648 = verf.f32 %v344_v17 }
  0xed   :  { %v1639_v20 = vpop.eup %1638  ;;  %1650 = verf.f32 %v342_v18  ;;  %v1436_v21 = vpop.f32.mrb[8].mxu0  ;;  %v403_v31 = vadd.f32 1.0, %v1637_v19 }
  0xee   :  { %v1641_v22 = vpop.eup %1640  ;;  %v1958_v23 = vadd.f32 %v1436_v21, %v1944_v58  ;;  %v210_v24 = vpop.f32.mrb[9].mxu0  ;;  %v401_v30 = vadd.f32 1.0, %v1639_v20 }
  0xef   :  { %v1643_v25 = vpop.eup %1642  ;;  %v404_v27 = vadd.f32 1.0, %v1641_v22  ;;  %v1961_v28 = vadd.f32 %v1944_v58, %v210_v24  ;;  %v1437_v29 = vpop.f32.mrb[10].mxu0  ;;  %v1979_v47 = vmul.f32 %v403_v31, %v307_v40 }
  0xf0   :  { %v347_v32 = vmul.f32 0.70710677, %v1958_v23  ;;  %v1965_v33 = vadd.f32 %v1437_v29, %v1944_v58  ;;  %v213_v34 = vpop.f32.mrb[11].mxu0  ;;  %v402_v35 = vadd.f32 1.0, %v1643_v25  ;;  %v1975_v44 = vmul.f32 %v401_v30, %v305_v36 }
  0xf1   :  { %v345_v38 = vmul.f32 0.70710677, %v1961_v28  ;;  %v1969_v39 = vadd.f32 %v1944_v58, %v213_v34  ;;  %v1971_v41 = vmul.f32 %v404_v27, %v308_v26  ;;  %v313_v25 = vmul.f32 0.5, %v1961_v28 }
  0xf2   :  { %1652 = verf.f32 %v347_v32  ;;  %v348_v42 = vmul.f32 0.70710677, %v1965_v33  ;;  %v1977_v45 = vmul.f32 %v402_v35, %v306_v37  ;;  %v316_v26 = vmul.f32 0.5, %v1965_v33 }
  0xf3   :  { %1654 = verf.f32 %v345_v38  ;;  %v346_v43 = vmul.f32 0.70710677, %v1969_v39  ;;  %v482_v55 = vpack.c.bf16 %v1971_v41, %v1979_v47  ;;  %v314_v32 = vmul.f32 0.5, %v1969_v39 }
  0xf4   :  { %v1645_v46 = vpop.eup %1644  ;;  %1656 = verf.f32 %v348_v42  ;;  %v481_v50 = vpack.c.bf16 %v1977_v45, %v1975_v44  ;;  %v315_v37 = vmul.f32 0.5, %v1958_v23 }
  0xf5   :  { %v1647_v48 = vpop.eup %1646  ;;  %1658 = verf.f32 %v346_v43  ;;  %v1440_v49 = vpop.f32.mrb[12].mxu0  ;;  %v407_v63 = vadd.f32 1.0, %v1645_v46 }
  0xf6   :  { %v1649_v51 = vpop.eup %1648  ;;  %v405_v52 = vadd.f32 1.0, %v1647_v48  ;;  %v1984_v53 = vadd.f32 %v1440_v49, %v1944_v58  ;;  %v226_v54 = vpop.f32.mrb[13].mxu0  ;;  %1474 = vmatprep.mubr.bf16.mxu1 %v481_v50 }
  0xf7   :  { %v1651_v56 = vpop.eup %1650  ;;  %v408_v60 = vadd.f32 1.0, %v1649_v51  ;;  %v1989_v61 = vadd.f32 %v1944_v58, %v226_v54  ;;  %v1441_v62 = vpop.f32.mrb[14].mxu0  ;;  %1475 = vmatmul.mubr.bf16.vlgmr.msra.gmra.mrb[0].mxu1 %v482_v55  ;;  %v2002_v14 = vmul.f32 %v407_v63, %v311_v4 }
  0xf8   :  { %v406_v1 = vadd.f32 1.0, %v1651_v56  ;;  %v351_v2 = vmul.f32 0.70710677, %v1984_v53  ;;  %v229_v3 = vpop.f32.mrb[15].mxu0  ;;  %v1993_v5 = vmul.f32 %v405_v52, %v309_v57  ;;  %v238_v7 = vadd.f32 %v1441_v62, %v1944_v58 }
  0xf9   :  { %v349_v6 = vmul.f32 0.70710677, %v1989_v61  ;;  %v1997_v9 = vmul.f32 %v408_v60, %v312_v59  ;;  %v230_v11 = vadd.f32 %v1944_v58, %v229_v3  ;;  %v317_v57 = vmul.f32 0.5, %v1989_v61 }
  0xfa   :  { %v1999_v10 = vmul.f32 %v406_v1, %v310_v0  ;;  %1660 = verf.f32 %v351_v2  ;;  %v352_v12 = vmul.f32 0.70710677, %v238_v7  ;;  %v320_v1 = vmul.f32 0.5, %v238_v7 }
  0xfb   :  { %1662 = verf.f32 %v349_v6  ;;  %v350_v15 = vmul.f32 0.70710677, %v230_v11  ;;  %v484_v22 = vpack.c.bf16 %v1997_v9, %v2002_v14  ;;  %v318_v6 = vmul.f32 0.5, %v230_v11 }
  0xfc   :  { %v1653_v13 = vpop.eup %1652  ;;  %v483_v8 = vpack.c.bf16 %v1999_v10, %v1993_v5  ;;  %1664 = verf.f32 %v352_v12  ;;  %v319_v61 = vmul.f32 0.5, %v1984_v53 }
  0xfd   :  { %v1655_v16 = vpop.eup %1654  ;;  %v1444_v17 = vpop.f32.mrb[16].mxu0  ;;  %1666 = verf.f32 %v350_v15  ;;  %v411_v31 = vadd.f32 1.0, %v1653_v13 }
  0xfe   :  { %v1657_v18 = vpop.eup %1656  ;;  %v409_v19 = vadd.f32 1.0, %v1655_v16  ;;  %v2007_v20 = vadd.f32 %v1444_v17, %v1944_v58  ;;  %v242_v21 = vpop.f32.mrb[17].mxu0  ;;  %1478 = vmatprep.mubr.bf16.mxu1 %v483_v8 }
  0xff   :  { %v1659_v24 = vpop.eup %1658  ;;  %v412_v27 = vadd.f32 1.0, %v1657_v18  ;;  %v2014_v29 = vadd.f32 %v1944_v58, %v242_v21  ;;  %v1445_v30 = vpop.f32.mrb[18].mxu0  ;;  %1479 = vmatmul.mubr.bf16.gmra.mrb[4].mxu1 %v484_v22  ;;  %v2028_v48 = vmul.f32 %v411_v31, %v315_v37 }
 0x100   :  { %v410_v34 = vadd.f32 1.0, %v1659_v24  ;;  %v355_v35 = vmul.f32 0.70710677, %v2007_v20  ;;  %v245_v36 = vpop.f32.mrb[19].mxu0  ;;  %v2019_v38 = vmul.f32 %v409_v19, %v313_v25  ;;  %v254_v33 = vadd.f32 %v1445_v30, %v1944_v58 }
 0x101   :  { %v353_v28 = vmul.f32 0.70710677, %v2014_v29  ;;  %v2023_v40 = vmul.f32 %v412_v27, %v316_v26  ;;  %v246_v39 = vadd.f32 %v1944_v58, %v245_v36  ;;  %v321_v31 = vmul.f32 0.5, %v2014_v29 }
 0x102   :  { %v2025_v42 = vmul.f32 %v410_v34, %v314_v32  ;;  %1668 = verf.f32 %v355_v35  ;;  %v356_v43 = vmul.f32 0.70710677, %v254_v33 }
 0x103   :  { %1670 = verf.f32 %v353_v28  ;;  %v354_v49 = vmul.f32 0.70710677, %v246_v39  ;;  %v486_v55 = vpack.c.bf16 %v2023_v40, %v2028_v48  ;;  %v324_v28 = vmul.f32 0.5, %v254_v33 }
 0x104   :  { %v1661_v46 = vpop.eup %1660  ;;  %v485_v23 = vpack.c.bf16 %v2025_v42, %v2019_v38  ;;  %1672 = verf.f32 %v356_v43 }
 0x105   :  { %v1663_v50 = vpop.eup %1662  ;;  %v1448_v51 = vpop.f32.mrb[20].mxu0  ;;  %1674 = verf.f32 %v354_v49  ;;  %v415_v0 = vadd.f32 1.0, %v1661_v46 }
 0x106   :  { %v2033_v52 = vadd.f32 %v1448_v51, %v1944_v58  ;;  %v258_v54 = vpop.f32.mrb[21].mxu0  ;;  %1482 = vmatprep.mubr.bf16.mxu1 %v485_v23  ;;  %v1665_v56 = vpop.eup %1664  ;;  %v413_v59 = vadd.f32 1.0, %v1663_v50  ;;  %v322_v23 = vmul.f32 0.5, %v246_v39 }
 0x107   :  { %v2039_v60 = vadd.f32 %v1944_v58, %v258_v54  ;;  %v1449_v62 = vpop.f32.mrb[22].mxu0  ;;  %v1667_v63 = vpop.eup %1666  ;;  %v416_v2 = vadd.f32 1.0, %v1665_v56  ;;  %1483 = vmatmul.mubr.bf16.gmra.mrb[8].mxu1 %v486_v55  ;;  %v2057_v19 = vmul.f32 %v415_v0, %v319_v61  ;;  %v323_v54 = vmul.f32 0.5, %v2007_v20 }
 0x108   :  { %v359_v3 = vmul.f32 0.70710677, %v2033_v52  ;;  %v261_v4 = vpop.f32.mrb[23].mxu0  ;;  %v414_v12 = vadd.f32 1.0, %v1667_v63  ;;  %v2044_v15 = vadd.f32 %v1449_v62, %v1944_v58  ;;  %v2052_v7 = vmul.f32 %v413_v59, %v317_v57 }
 0x109   :  { %v357_v13 = vmul.f32 0.70710677, %v2039_v60  ;;  %v2047_v8 = vmul.f32 %v416_v2, %v320_v1  ;;  %v2050_v16 = vadd.f32 %v1944_v58, %v261_v4 }
 0x10a   :  { %1676 = verf.f32 %v359_v3  ;;  %v2054_v17 = vmul.f32 %v414_v12, %v318_v6  ;;  %v360_v11 = vmul.f32 0.70710677, %v2044_v15  ;;  %v325_v12 = vmul.f32 0.5, %v2039_v60 }
 0x10b   :  { %1678 = verf.f32 %v357_v13  ;;  %v358_v21 = vmul.f32 0.70710677, %v2050_v16  ;;  %v488_v27 = vpack.c.bf16 %v2047_v8, %v2057_v19 }
 0x10c   :  { %v1669_v18 = vpop.eup %1668  ;;  %1680 = verf.f32 %v360_v11  ;;  %v487_v24 = vpack.c.bf16 %v2054_v17, %v2052_v7 }
 0x10d   :  { %v1671_v22 = vpop.eup %1670  ;;  %v1452_v53 = vpop.f32.mrb[24].mxu0  ;;  %1682 = verf.f32 %v358_v21  ;;  %v419_v37 = vadd.f32 1.0, %v1669_v18 }
 0x10e   :  { %v2063_v25 = vadd.f32 %v1452_v53, %v1944_v58  ;;  %v274_v26 = vpop.f32.mrb[25].mxu0  ;;  %v1673_v30 = vpop.eup %1672  ;;  %v417_v32 = vadd.f32 1.0, %v1671_v22  ;;  %1486 = vmatprep.mubr.bf16.mxu1 %v487_v24  ;;  %v328_v22 = vmul.f32 0.5, %v2044_v15 }
 0x10f   :  { %v2069_v34 = vadd.f32 %v1944_v58, %v274_v26  ;;  %v1453_v35 = vpop.f32.mrb[26].mxu0  ;;  %v1675_v36 = vpop.eup %1674  ;;  %v420_v43 = vadd.f32 1.0, %v1673_v30  ;;  %1487 = vmatmul.mubr.bf16.gmra.mrb[12].mxu1 %v488_v27  ;;  %v2082_v39 = vmul.f32 %v419_v37, %v323_v54  ;;  %v326_v27 = vmul.f32 0.5, %v2050_v16 }
 0x110   :  { %v363_v46 = vmul.f32 0.70710677, %v2063_v25  ;;  %v277_v49 = vpop.f32.mrb[27].mxu0  ;;  %v418_v50 = vadd.f32 1.0, %v1675_v36  ;;  %v286_v29 = vadd.f32 %v1453_v35, %v1944_v58  ;;  %v2078_v57 = vmul.f32 %v417_v32, %v321_v31 }
 0x111   :  { %v361_v51 = vmul.f32 0.70710677, %v2069_v34  ;;  %v2075_v55 = vmul.f32 %v420_v43, %v324_v28  ;;  %v278_v56 = vadd.f32 %v1944_v58, %v277_v49  ;;  %v327_v32 = vmul.f32 0.5, %v2033_v52 }
 0x112   :  { %1684 = verf.f32 %v363_v46  ;;  %v2080_v33 = vmul.f32 %v418_v50, %v322_v23  ;;  %v364_v59 = vmul.f32 0.70710677, %v286_v29 }
 0x113   :  { %1686 = verf.f32 %v361_v51  ;;  %v362_v63 = vmul.f32 0.70710677, %v278_v56  ;;  %v490_v4 = vpack.c.bf16 %v2075_v55, %v2082_v39 }
 0x114   :  { %v1677_v62 = vpop.eup %1676  ;;  %1688 = verf.f32 %v364_v59  ;;  %v489_v20 = vpack.c.bf16 %v2080_v33, %v2078_v57  ;;  %v332_v59 = vmul.f32 0.5, %v286_v29 }
 0x115   :  { %v1679_v0 = vpop.eup %1678  ;;  %v1456_v1 = vpop.f32.mrb[28].mxu0  ;;  %1690 = verf.f32 %v362_v63  ;;  %v423_v21 = vadd.f32 1.0, %v1677_v62  ;;  %v329_v63 = vmul.f32 0.5, %v2069_v34 }
 0x116   :  { %v2087_v2 = vadd.f32 %v1456_v1, %v1944_v58  ;;  %v290_v3 = vpop.f32.mrb[29].mxu0  ;;  %v1681_v6 = vpop.eup %1680  ;;  %v421_v13 = vadd.f32 1.0, %v1679_v0  ;;  %1490 = vmatprep.mubr.bf16.mxu1 %v489_v20  ;;  %v330_v0 = vmul.f32 0.5, %v278_v56  ;;  %v331_v20 = vmul.f32 0.5, %v2063_v25 }
 0x117   :  { %v291_v61 = vadd.f32 %v1944_v58, %v290_v3  ;;  %v1457_v11 = vpop.f32.mrb[30].mxu0  ;;  %v1683_v18 = vpop.eup %1682  ;;  %v424_v53 = vadd.f32 1.0, %v1681_v6  ;;  %1491 = vmatmul.mubr.bf16.gmra.mrb[16].mxu1 %v490_v4  ;;  %v2105_v46 = vmul.f32 %v423_v21, %v327_v32 }
 0x118   :  { %v367_v24 = vmul.f32 0.70710677, %v2087_v2  ;;  %v293_v26 = vpop.f32.mrb[31].mxu0  ;;  %v422_v30 = vadd.f32 1.0, %v1683_v18  ;;  %v302_v60 = vadd.f32 %v1457_v11, %v1944_v58  ;;  %v2101_v37 = vmul.f32 %v421_v13, %v325_v12 }
 0x119   :  { %v365_v31 = vmul.f32 0.70710677, %v291_v61  ;;  %v2098_v35 = vmul.f32 %v424_v53, %v328_v22  ;;  %v294_v36 = vadd.f32 %v1944_v58, %v293_v26 }
 0x11a   :  { %1692 = verf.f32 %v367_v24  ;;  %v2103_v15 = vmul.f32 %v422_v30, %v326_v27  ;;  %v368_v28 = vmul.f32 0.70710677, %v302_v60  ;;  %v336_v22 = vmul.f32 0.5, %v302_v60 }
 0x11b   :  { %1694 = verf.f32 %v365_v31  ;;  %v366_v16 = vmul.f32 0.70710677, %v294_v36  ;;  %v492_v23 = vpack.c.bf16 %v2098_v35, %v2105_v46  ;;  %v333_v24 = vmul.f32 0.5, %v291_v61  ;;  %v1629_v61 = vld [vmem:[%s2529_s4 + $0x8] sm:$0xff]  }
 0x11c   :  { %v1685_v43 = vpop.eup %1684  ;;  %1696 = verf.f32 %v368_v28  ;;  %v491_v52 = vpack.c.bf16 %v2103_v15, %v2101_v37  ;;  %v334_v26 = vmul.f32 0.5, %v294_v36  ;;  %v335_v30 = vmul.f32 0.5, %v2087_v2  ;;  %v1628_v2 = vld [vmem:[%s2529_s4] sm:$0xff]   ;;  %v1630_v36 = vld [vmem:[%s2529_s4 + $0x10] sm:$0xff]  }
 0x11d   :  { %v1687_v49 = vpop.eup %1686  ;;  %1698 = verf.f32 %v366_v16  ;;  %v427_v54 = vadd.f32 1.0, %v1685_v43  ;;  %1602 = vmatprep.subr.bf16.mxu1 %v1628_v2  ;;  %1554 = vmatprep.subr.bf16.mxu0 %v1628_v2 }
 0x11e   :  { %v1689_v58 = vpop.eup %1688  ;;  %v425_v50 = vadd.f32 1.0, %v1687_v49  ;;  %1494 = vmatprep.mubr.bf16.mxu1 %v491_v52  ;;  %1610 = vmatpush3.bf16.msra.mxu1 %v1628_v2  ;;  %v1631_v49 = vld [vmem:[%s2529_s4 + $0x18] sm:$0xff]   ;;  %v2153_v52 = vld [vmem:[%s2529_s4 + $0x20] sm:$0xff]  }
 0x11f   :  { %v1691_v51 = vpop.eup %1690  ;;  %v428_v62 = vadd.f32 1.0, %v1689_v58  ;;  %1495 = vmatmul.mubr.bf16.gmra.mrb[20].mxu1 %v492_v23  ;;  %v2119_v13 = vmul.f32 %v427_v54, %v331_v20  ;;  %1603 = vmatprep.subr.bf16.mxu1 %v1629_v61 }
 0x120   :  { %v426_v1 = vadd.f32 1.0, %v1691_v51  ;;  %v2115_v4 = vmul.f32 %v425_v50, %v329_v63 }
 0x121   :  { %v2113_v3 = vmul.f32 %v428_v62, %v332_v59 }
 0x122   :  { %v2117_v6 = vmul.f32 %v426_v1, %v330_v0  ;;  %1611 = vmatpush3.bf16.msra.mxu1 %v1629_v61 }
 0x123   :  { %v494_v34 = vpack.c.bf16 %v2113_v3, %v2119_v13  ;;  %1604 = vmatprep.subr.bf16.mxu1 %v1630_v36 }
 0x124   :  { %v1693_v12 = vpop.eup %1692  ;;  %v493_v29 = vpack.c.bf16 %v2117_v6, %v2115_v4 }
 0x125   :  { %v1695_v11 = vpop.eup %1694  ;;  %v431_v21 = vadd.f32 1.0, %v1693_v12 }
 0x126   :  { %v1697_v56 = vpop.eup %1696  ;;  %v429_v18 = vadd.f32 1.0, %v1695_v11  ;;  %1498 = vmatprep.mubr.bf16.mxu1 %v493_v29  ;;  %1612 = vmatpush3.bf16.msra.mxu1 %v1630_v36 }
 0x127   :  { %v1699_v25 = vpop.eup %1698  ;;  %v432_v53 = vadd.f32 1.0, %v1697_v56  ;;  %1499 = vmatmul.mubr.bf16.gmra.mrb[24].mxu1 %v494_v34  ;;  %v2132_v43 = vmul.f32 %v431_v21, %v335_v30  ;;  %1605 = vmatprep.subr.bf16.mxu1 %v1631_v49 }
 0x128   :  { %v430_v27 = vadd.f32 1.0, %v1699_v25  ;;  %v2128_v32 = vmul.f32 %v429_v18, %v333_v24 }
 0x129   :  { %v2126_v31 = vmul.f32 %v432_v53, %v336_v22 }
 0x12a   :  { %v2130_v28 = vmul.f32 %v430_v27, %v334_v26  ;;  %1613 = vmatpush3.bf16.msra.mxu1 %v1631_v49 }
 0x12b   :  { %v496_v60 = vpack.c.bf16 %v2126_v31, %v2132_v43  ;;  %1606 = vmatprep.subr.bf16.mxu1 %v2153_v52 }
 0x12c   :  { %v495_v16 = vpack.c.bf16 %v2130_v28, %v2128_v32 }
 0x12e   :  { %1502 = vmatprep.mubr.bf16.mxu1 %v495_v16  ;;  %1614 = vmatpush3.bf16.msra.mxu1 %v2153_v52 }
 0x12f   :  { %1503 = vmatmul.mubr.bf16.gmra.mrb[28].mxu1 %v496_v60 }
 0x1ca   :  { %v1476_v23 = vpop.f32.mrb[0].mxu1 }
 0x1cb   :  { %v579_v58 = vpop.f32.mrb[1].mxu1  ;;  %v2161_v54 = vsub.f32 %v1979_v47, %v1476_v23 }
 0x1cc   :  { %v2158_v50 = vsub.f32 %v1975_v44, %v579_v58  ;;  %v1477_v51 = vpop.f32.mrb[2].mxu1 }
 0x1cd   :  { %v2164_v59 = vsub.f32 %v1971_v41, %v1477_v51  ;;  %v582_v62 = vpop.f32.mrb[3].mxu1  ;;  %v740_v47 = vmul.f32 %v2161_v54, %v2161_v54 }
 0x1ce   :  { %v2167_v63 = vsub.f32 %v1977_v45, %v582_v62  ;;  %v738_v1 = vmul.f32 %v2158_v50, %v2158_v50 }
 0x1cf   :  { %v741_v0 = vmul.f32 %v2164_v59, %v2164_v59 }
 0x1d0   :  { %v739_v44 = vmul.f32 %v2167_v63, %v2167_v63 }
 0x1d1   :  { %v771_v41 = vpack.c.bf16 %v741_v0, %v740_v47 }
 0x1d2   :  { %v1480_v20 = vpop.f32.mrb[4].mxu1  ;;  %v770_v12 = vpack.c.bf16 %v739_v44, %v738_v1 }
 0x1d3   :  { %v595_v11 = vpop.f32.mrb[5].mxu1  ;;  %v2181_v34 = vsub.f32 %v2002_v14, %v1480_v20 }
 0x1d4   :  { %v2178_v29 = vsub.f32 %v1993_v5, %v595_v11  ;;  %v1481_v45 = vpop.f32.mrb[6].mxu1  ;;  %1522 = vmatprep.mubr.bf16.mxu0 %v770_v12 }
 0x1d5   :  { %v2184_v56 = vsub.f32 %v1997_v9, %v1481_v45  ;;  %v598_v18 = vpop.f32.mrb[7].mxu1  ;;  %1523 = vmatmul.mubr.bf16.vlgmr.msra.gmra.mrb[32].mxu0 %v771_v41  ;;  %v744_v9 = vmul.f32 %v2181_v34, %v2181_v34 }
 0x1d6   :  { %v2187_v25 = vsub.f32 %v1999_v10, %v598_v18  ;;  %1555 = vmatpush3.bf16.msra.mxu0 %v1628_v2  ;;  %v742_v5 = vmul.f32 %v2178_v29, %v2178_v29 }
 0x1d7   :  { %v745_v21 = vmul.f32 %v2184_v56, %v2184_v56  ;;  %1556 = vmatprep.subr.bf16.mxu0 %v1629_v61 }
 0x1d8   :  { %v743_v14 = vmul.f32 %v2187_v25, %v2187_v25 }
 0x1d9   :  { %v773_v10 = vpack.c.bf16 %v745_v21, %v744_v9 }
 0x1da   :  { %v1484_v22 = vpop.f32.mrb[8].mxu1  ;;  %v772_v53 = vpack.c.bf16 %v743_v14, %v742_v5  ;;  %1557 = vmatpush3.bf16.msra.mxu0 %v1629_v61 }
 0x1db   :  { %v611_v24 = vpop.f32.mrb[9].mxu1  ;;  %1558 = vmatprep.subr.bf16.mxu0 %v1630_v36  ;;  %v2201_v30 = vsub.f32 %v2028_v48, %v1484_v22 }
 0x1dc   :  { %v2198_v26 = vsub.f32 %v2019_v38, %v611_v24  ;;  %v1485_v27 = vpop.f32.mrb[10].mxu1  ;;  %1526 = vmatprep.mubr.bf16.mxu0 %v772_v53 }
 0x1dd   :  { %v2204_v16 = vsub.f32 %v2023_v40, %v1485_v27  ;;  %v614_v60 = vpop.f32.mrb[11].mxu1  ;;  %1527 = vmatmul.mubr.bf16.gmra.mrb[36].mxu0 %v773_v10  ;;  %v748_v40 = vmul.f32 %v2201_v30, %v2201_v30 }
 0x1de   :  { %v2207_v2 = vsub.f32 %v2025_v42, %v614_v60  ;;  %1559 = vmatpush3.bf16.msra.mxu0 %v1630_v36  ;;  %v746_v38 = vmul.f32 %v2198_v26, %v2198_v26 }
 0x1df   :  { %v749_v61 = vmul.f32 %v2204_v16, %v2204_v16  ;;  %1560 = vmatprep.subr.bf16.mxu0 %v1631_v49 }
 0x1e0   :  { %v747_v48 = vmul.f32 %v2207_v2, %v2207_v2 }
 0x1e1   :  { %v775_v42 = vpack.c.bf16 %v749_v61, %v748_v40 }
 0x1e2   :  { %v1488_v23 = vpop.f32.mrb[12].mxu1  ;;  %v774_v58 = vpack.c.bf16 %v747_v48, %v746_v38  ;;  %1561 = vmatpush3.bf16.msra.mxu0 %v1631_v49 }
 0x1e3   :  { %v627_v51 = vpop.f32.mrb[13].mxu1  ;;  %1562 = vmatprep.subr.bf16.mxu0 %v2153_v52  ;;  %v2222_v0 = vsub.f32 %v2057_v19, %v1488_v23 }
 0x1e4   :  { %v2219_v36 = vsub.f32 %v2052_v7, %v627_v51  ;;  %v1489_v62 = vpop.f32.mrb[14].mxu1  ;;  %1530 = vmatprep.mubr.bf16.mxu0 %v774_v58 }
 0x1e5   :  { %v2225_v1 = vsub.f32 %v2047_v8, %v1489_v62  ;;  %v630_v44 = vpop.f32.mrb[15].mxu1  ;;  %1531 = vmatmul.mubr.bf16.gmra.mrb[40].mxu0 %v775_v42  ;;  %v752_v8 = vmul.f32 %v2222_v0, %v2222_v0 }
 0x1e6   :  { %v2228_v47 = vsub.f32 %v2054_v17, %v630_v44  ;;  %1563 = vmatpush3.bf16.msra.mxu0 %v2153_v52  ;;  %v750_v7 = vmul.f32 %v2219_v36, %v2219_v36 }
 0x1e7   :  { %v753_v49 = vmul.f32 %v2225_v1, %v2225_v1 }
 0x1e8   :  { %v751_v19 = vmul.f32 %v2228_v47, %v2228_v47 }
 0x1e9   :  { %v777_v11 = vpack.c.bf16 %v753_v49, %v752_v8 }
 0x1ea   :  { %v1492_v20 = vpop.f32.mrb[16].mxu1  ;;  %v776_v12 = vpack.c.bf16 %v751_v19, %v750_v7 }
 0x1eb   :  { %v643_v41 = vpop.f32.mrb[17].mxu1  ;;  %v2243_v45 = vsub.f32 %v2082_v39, %v1492_v20 }
 0x1ec   :  { %v2240_v17 = vsub.f32 %v2078_v57, %v643_v41  ;;  %v1493_v52 = vpop.f32.mrb[18].mxu1  ;;  %1534 = vmatprep.mubr.bf16.mxu0 %v776_v12 }
 0x1ed   :  { %v2246_v18 = vsub.f32 %v2075_v55, %v1493_v52  ;;  %v646_v21 = vpop.f32.mrb[19].mxu1  ;;  %1535 = vmatmul.mubr.bf16.gmra.mrb[44].mxu0 %v777_v11  ;;  %v756_v39 = vmul.f32 %v2243_v45, %v2243_v45 }
 0x1ee   :  { %v2249_v5 = vsub.f32 %v2080_v33, %v646_v21  ;;  %v754_v57 = vmul.f32 %v2240_v17, %v2240_v17 }
 0x1ef   :  { %v757_v14 = vmul.f32 %v2246_v18, %v2246_v18 }
 0x1f0   :  { %v755_v9 = vmul.f32 %v2249_v5, %v2249_v5 }
 0x1f1   :  { %v779_v24 = vpack.c.bf16 %v757_v14, %v756_v39 }
 0x1f2   :  { %v1496_v22 = vpop.f32.mrb[20].mxu1  ;;  %v778_v55 = vpack.c.bf16 %v755_v9, %v754_v57 }
 0x1f3   :  { %v659_v53 = vpop.f32.mrb[21].mxu1  ;;  %v2263_v27 = vsub.f32 %v2105_v46, %v1496_v22 }
 0x1f4   :  { %v2260_v10 = vsub.f32 %v2101_v37, %v659_v53  ;;  %v1497_v33 = vpop.f32.mrb[22].mxu1  ;;  %1538 = vmatprep.mubr.bf16.mxu0 %v778_v55  ;;  %v1634_v55 = vld [vmem:[%s2529_s4 + $0x30] sm:$0xff]   ;;  %v1635_v53 = vld [vmem:[%s2529_s4 + $0x38] sm:$0xff]  }
 0x1f5   :  { %v2266_v60 = vsub.f32 %v2098_v35, %v1497_v33  ;;  %v662_v61 = vpop.f32.mrb[23].mxu1  ;;  %1539 = vmatmul.mubr.bf16.gmra.mrb[48].mxu0 %v779_v24  ;;  %v760_v46 = vmul.f32 %v2263_v27, %v2263_v27 }
 0x1f6   :  { %v2269_v38 = vsub.f32 %v2103_v15, %v662_v61  ;;  %v758_v37 = vmul.f32 %v2260_v10, %v2260_v10 }
 0x1f7   :  { %v761_v48 = vmul.f32 %v2266_v60, %v2266_v60 }
 0x1f8   :  { %v759_v40 = vmul.f32 %v2269_v38, %v2269_v38 }
 0x1f9   :  { %v781_v51 = vpack.c.bf16 %v761_v48, %v760_v46 }
 0x1fa   :  { %v1500_v23 = vpop.f32.mrb[24].mxu1  ;;  %v780_v35 = vpack.c.bf16 %v759_v40, %v758_v37 }
 0x1fb   :  { %v675_v58 = vpop.f32.mrb[25].mxu1  ;;  %v2283_v62 = vsub.f32 %v2119_v13, %v1500_v23 }
 0x1fc   :  { %v2280_v42 = vsub.f32 %v2115_v4, %v675_v58  ;;  %v1501_v15 = vpop.f32.mrb[26].mxu1  ;;  %1542 = vmatprep.mubr.bf16.mxu0 %v780_v35 }
 0x1fd   :  { %v2286_v44 = vsub.f32 %v2113_v3, %v1501_v15  ;;  %v678_v49 = vpop.f32.mrb[27].mxu1  ;;  %1543 = vmatmul.mubr.bf16.gmra.mrb[52].mxu0 %v781_v51  ;;  %v764_v13 = vmul.f32 %v2283_v62, %v2283_v62 }
 0x1fe   :  { %v2289_v7 = vsub.f32 %v2117_v6, %v678_v49  ;;  %v762_v4 = vmul.f32 %v2280_v42, %v2280_v42 }
 0x1ff   :  { %v765_v19 = vmul.f32 %v2286_v44, %v2286_v44 }
 0x200   :  { %v763_v8 = vmul.f32 %v2289_v7, %v2289_v7 }
 0x201   :  { %v783_v41 = vpack.c.bf16 %v765_v19, %v764_v13 }
 0x202   :  { %v1504_v20 = vpop.f32.mrb[28].mxu1  ;;  %v782_v3 = vpack.c.bf16 %v763_v8, %v762_v4 }
 0x203   :  { %v691_v12 = vpop.f32.mrb[29].mxu1  ;;  %v2303_v52 = vsub.f32 %v2132_v43, %v1504_v20 }
 0x204   :  { %v2300_v11 = vsub.f32 %v2128_v32, %v691_v12  ;;  %v1505_v6 = vpop.f32.mrb[30].mxu1  ;;  %1546 = vmatprep.mubr.bf16.mxu0 %v782_v3 }
 0x205   :  { %v2306_v21 = vsub.f32 %v2126_v31, %v1505_v6  ;;  %v694_v14 = vpop.f32.mrb[31].mxu1  ;;  %1547 = vmatmul.mubr.bf16.gmra.mrb[56].mxu0 %v783_v41  ;;  %v768_v43 = vmul.f32 %v2303_v52, %v2303_v52 }
 0x206   :  { %v2309_v57 = vsub.f32 %v2130_v28, %v694_v14  ;;  %v766_v32 = vmul.f32 %v2300_v11, %v2300_v11  ;;  %v1633_v28 = vld [vmem:[%s2529_s4 + $0x28] sm:$0xff]  }
 0x207   :  { %v769_v9 = vmul.f32 %v2306_v21, %v2306_v21  ;;  %1607 = vmatprep.subr.bf16.mxu1 %v1633_v28  ;;  %1564 = vmatprep.subr.bf16.mxu0 %v1633_v28 }
 0x208   :  { %v767_v39 = vmul.f32 %v2309_v57, %v2309_v57  ;;  %1615 = vmatpush3.bf16.msra.mxu1 %v1633_v28  ;;  %1565 = vmatpush3.bf16.msra.mxu0 %v1633_v28 }
 0x209   :  { %v785_v31 = vpack.c.bf16 %v769_v9, %v768_v43  ;;  %1608 = vmatprep.subr.bf16.mxu1 %v1634_v55  ;;  %1566 = vmatprep.subr.bf16.mxu0 %v1634_v55 }
 0x20a   :  { %v784_v22 = vpack.c.bf16 %v767_v39, %v766_v32 }
 0x20c   :  { %1550 = vmatprep.mubr.bf16.mxu0 %v784_v22  ;;  %1616 = vmatpush3.bf16.msra.mxu1 %v1634_v55 }
 0x20d   :  { %1551 = vmatmul.mubr.bf16.gmra.mrb[60].mxu0 %v785_v31  ;;  %1609 = vmatprep.subr.bf16.mxu1 %v1635_v53 }
 0x20e   :  { %1567 = vmatpush3.bf16.msra.mxu0 %v1634_v55 }
 0x20f   :  { %1568 = vmatprep.subr.bf16.mxu0 %v1635_v53 }
 0x210   :  { %1617 = vmatpush3.bf16.msra.mxu1 %v1635_v53 }
 0x212   :  { %1569 = vmatpush3.bf16.msra.mxu0 %v1635_v53 }
 0x2a8   :  { %v1524_v24 = vpop.f32.mrb[32].mxu0 }
 0x2a9   :  { %v829_v33 = vadd.f32 1e-05, %v1524_v24  ;;  %v820_v61 = vpop.f32.mrb[33].mxu0 }
 0x2aa   :  { %v821_v48 = vadd.f32 1e-05, %v820_v61  ;;  %v1525_v37 = vpop.f32.mrb[34].mxu0 }
 0x2ab   :  { %1700 = vrsqrt.f32 %v829_v33  ;;  %v832_v40 = vadd.f32 1e-05, %v1525_v37  ;;  %v823_v46 = vpop.f32.mrb[35].mxu0 }
 0x2ac   :  { %1702 = vrsqrt.f32 %v821_v48  ;;  %v824_v23 = vadd.f32 1e-05, %v823_v46 }
 0x2ad   :  { %1704 = vrsqrt.f32 %v832_v40 }
 0x2ae   :  { %1706 = vrsqrt.f32 %v824_v23 }
 0x2b0   :  { %v1528_v35 = vpop.f32.mrb[36].mxu0 }
 0x2b1   :  { %v845_v58 = vadd.f32 1e-05, %v1528_v35  ;;  %v836_v51 = vpop.f32.mrb[37].mxu0 }
 0x2b2   :  { %v837_v15 = vadd.f32 1e-05, %v836_v51  ;;  %v1529_v49 = vpop.f32.mrb[38].mxu0 }
 0x2b3   :  { %1708 = vrsqrt.f32 %v845_v58  ;;  %v848_v19 = vadd.f32 1e-05, %v1529_v49  ;;  %v839_v4 = vpop.f32.mrb[39].mxu0 }
 0x2b4   :  { %1710 = vrsqrt.f32 %v837_v15  ;;  %v840_v8 = vadd.f32 1e-05, %v839_v4 }
 0x2b5   :  { %v1701_v13 = vpop.eup %1700  ;;  %1712 = vrsqrt.f32 %v848_v19 }
 0x2b6   :  { %v1703_v20 = vpop.eup %1702  ;;  %1714 = vrsqrt.f32 %v840_v8  ;;  %v981_v41 = vmul.f32 %v1701_v13, %v2161_v54 }
 0x2b7   :  { %v1705_v3 = vpop.eup %1704  ;;  %v979_v39 = vmul.f32 %v1703_v20, %v2158_v50 }
 0x2b8   :  { %v1707_v12 = vpop.eup %1706  ;;  %v982_v6 = vmul.f32 %v1705_v3, %v2164_v59  ;;  %v1532_v14 = vpop.f32.mrb[40].mxu0 }
 0x2b9   :  { %v861_v9 = vadd.f32 1e-05, %v1532_v14  ;;  %v852_v32 = vpop.f32.mrb[41].mxu0  ;;  %v980_v43 = vmul.f32 %v1707_v12, %v2167_v63 }
 0x2ba   :  { %v853_v22 = vadd.f32 1e-05, %v852_v32  ;;  %v1533_v31 = vpop.f32.mrb[42].mxu0  ;;  %v1012_v28 = vpack.c.bf16 %v982_v6, %v981_v41 }
 0x2bb   :  { %1716 = vrsqrt.f32 %v861_v9  ;;  %v864_v55 = vadd.f32 1e-05, %v1533_v31  ;;  %v855_v53 = vpop.f32.mrb[43].mxu0  ;;  %v1011_v24 = vpack.c.bf16 %v980_v43, %v979_v39 }
 0x2bc   :  { %1718 = vrsqrt.f32 %v853_v22  ;;  %v856_v33 = vadd.f32 1e-05, %v855_v53 }
 0x2bd   :  { %v1709_v61 = vpop.eup %1708  ;;  %1720 = vrsqrt.f32 %v864_v55  ;;  %1570 = vmatprep.mubr.bf16.mxu0 %v1011_v24 }
 0x2be   :  { %v1711_v54 = vpop.eup %1710  ;;  %1722 = vrsqrt.f32 %v856_v33  ;;  %1571 = vmatmul.mubr.bf16.vlgmr.msra.gmra.mrb[64].mxu0 %v1012_v28  ;;  %v985_v50 = vmul.f32 %v1709_v61, %v2181_v34 }
 0x2bf   :  { %v1713_v59 = vpop.eup %1712  ;;  %v983_v23 = vmul.f32 %v1711_v54, %v2178_v29 }
 0x2c0   :  { %v1715_v48 = vpop.eup %1714  ;;  %v986_v63 = vmul.f32 %v1713_v59, %v2184_v56  ;;  %v1536_v37 = vpop.f32.mrb[44].mxu0 }
 0x2c1   :  { %v877_v40 = vadd.f32 1e-05, %v1536_v37  ;;  %v868_v46 = vpop.f32.mrb[45].mxu0  ;;  %v984_v35 = vmul.f32 %v1715_v48, %v2187_v25 }
 0x2c2   :  { %v869_v58 = vadd.f32 1e-05, %v868_v46  ;;  %v1537_v51 = vpop.f32.mrb[46].mxu0  ;;  %v1014_v15 = vpack.c.bf16 %v986_v63, %v985_v50 }
 0x2c3   :  { %1724 = vrsqrt.f32 %v877_v40  ;;  %v880_v49 = vadd.f32 1e-05, %v1537_v51  ;;  %v871_v19 = vpop.f32.mrb[47].mxu0  ;;  %v1013_v4 = vpack.c.bf16 %v984_v35, %v983_v23 }
 0x2c4   :  { %1726 = vrsqrt.f32 %v869_v58  ;;  %v872_v8 = vadd.f32 1e-05, %v871_v19 }
 0x2c5   :  { %v1717_v13 = vpop.eup %1716  ;;  %1728 = vrsqrt.f32 %v880_v49  ;;  %1574 = vmatprep.mubr.bf16.mxu1 %v1013_v4 }
 0x2c6   :  { %v1719_v34 = vpop.eup %1718  ;;  %1730 = vrsqrt.f32 %v872_v8  ;;  %1575 = vmatmul.mubr.bf16.vlgmr.msra.gmra.mrb[32].mxu1 %v1014_v15  ;;  %v989_v25 = vmul.f32 %v1717_v13, %v2201_v30 }
 0x2c7   :  { %v1721_v56 = vpop.eup %1720  ;;  %v987_v6 = vmul.f32 %v1719_v34, %v2198_v26 }
 0x2c8   :  { %v1723_v20 = vpop.eup %1722  ;;  %v1540_v29 = vpop.f32.mrb[48].mxu0  ;;  %v990_v3 = vmul.f32 %v1721_v56, %v2204_v16 }
 0x2c9   :  { %v893_v12 = vadd.f32 1e-05, %v1540_v29  ;;  %v884_v41 = vpop.f32.mrb[49].mxu0  ;;  %v988_v14 = vmul.f32 %v1723_v20, %v2207_v2 }
 0x2ca   :  { %v885_v9 = vadd.f32 1e-05, %v884_v41  ;;  %v1541_v32 = vpop.f32.mrb[50].mxu0  ;;  %v1016_v39 = vpack.c.bf16 %v990_v3, %v989_v25 }
 0x2cb   :  { %1732 = vrsqrt.f32 %v893_v12  ;;  %v896_v43 = vadd.f32 1e-05, %v1541_v32  ;;  %v887_v22 = vpop.f32.mrb[51].mxu0  ;;  %v1015_v31 = vpack.c.bf16 %v988_v14, %v987_v6 }
 0x2cc   :  { %1734 = vrsqrt.f32 %v885_v9  ;;  %v888_v28 = vadd.f32 1e-05, %v887_v22 }
 0x2cd   :  { %v1725_v55 = vpop.eup %1724  ;;  %1736 = vrsqrt.f32 %v896_v43  ;;  %1578 = vmatprep.mubr.bf16.mxu1 %v1015_v31 }
 0x2ce   :  { %v1727_v30 = vpop.eup %1726  ;;  %1738 = vrsqrt.f32 %v888_v28  ;;  %1579 = vmatmul.mubr.bf16.gmra.mrb[36].mxu1 %v1016_v39  ;;  %v993_v2 = vmul.f32 %v1725_v55, %v2222_v0 }
 0x2cf   :  { %v1729_v16 = vpop.eup %1728  ;;  %v991_v54 = vmul.f32 %v1727_v30, %v2219_v36 }
 0x2d0   :  { %v1731_v53 = vpop.eup %1730  ;;  %v1544_v26 = vpop.f32.mrb[52].mxu0  ;;  %v994_v24 = vmul.f32 %v1729_v16, %v2225_v1 }
 0x2d1   :  { %v909_v33 = vadd.f32 1e-05, %v1544_v26  ;;  %v900_v61 = vpop.f32.mrb[53].mxu0  ;;  %v992_v59 = vmul.f32 %v1731_v53, %v2228_v47 }
 0x2d2   :  { %v901_v48 = vadd.f32 1e-05, %v900_v61  ;;  %v1545_v50 = vpop.f32.mrb[54].mxu0  ;;  %v1018_v63 = vpack.c.bf16 %v994_v24, %v993_v2 }
 0x2d3   :  { %1740 = vrsqrt.f32 %v909_v33  ;;  %v912_v37 = vadd.f32 1e-05, %v1545_v50  ;;  %v903_v40 = vpop.f32.mrb[55].mxu0  ;;  %v1017_v46 = vpack.c.bf16 %v992_v59, %v991_v54 }
 0x2d4   :  { %1742 = vrsqrt.f32 %v901_v48  ;;  %v904_v23 = vadd.f32 1e-05, %v903_v40 }
 0x2d5   :  { %v1733_v35 = vpop.eup %1732  ;;  %1744 = vrsqrt.f32 %v912_v37  ;;  %1582 = vmatprep.mubr.bf16.mxu1 %v1017_v46 }
 0x2d6   :  { %v1735_v0 = vpop.eup %1734  ;;  %1746 = vrsqrt.f32 %v904_v23  ;;  %1583 = vmatmul.mubr.bf16.gmra.mrb[40].mxu1 %v1018_v63  ;;  %v997_v47 = vmul.f32 %v1733_v35, %v2243_v45 }
 0x2d7   :  { %v1737_v1 = vpop.eup %1736  ;;  %v995_v19 = vmul.f32 %v1735_v0, %v2240_v17 }
 0x2d8   :  { %v1739_v58 = vpop.eup %1738  ;;  %v1548_v36 = vpop.f32.mrb[56].mxu0  ;;  %v998_v51 = vmul.f32 %v1737_v1, %v2246_v18 }
 0x2d9   :  { %v925_v15 = vadd.f32 1e-05, %v1548_v36  ;;  %v916_v49 = vpop.f32.mrb[57].mxu0  ;;  %v996_v4 = vmul.f32 %v1739_v58, %v2249_v5 }
 0x2da   :  { %v917_v8 = vadd.f32 1e-05, %v916_v49  ;;  %v1549_v13 = vpop.f32.mrb[58].mxu0  ;;  %v1020_v34 = vpack.c.bf16 %v998_v51, %v997_v47 }
 0x2db   :  { %1748 = vrsqrt.f32 %v925_v15  ;;  %v928_v56 = vadd.f32 1e-05, %v1549_v13  ;;  %v919_v20 = vpop.f32.mrb[59].mxu0  ;;  %v1019_v29 = vpack.c.bf16 %v996_v4, %v995_v19 }
 0x2dc   :  { %1750 = vrsqrt.f32 %v917_v8  ;;  %v920_v25 = vadd.f32 1e-05, %v919_v20 }
 0x2dd   :  { %v1741_v3 = vpop.eup %1740  ;;  %1752 = vrsqrt.f32 %v928_v56  ;;  %1586 = vmatprep.mubr.bf16.mxu1 %v1019_v29 }
 0x2de   :  { %v1743_v45 = vpop.eup %1742  ;;  %1754 = vrsqrt.f32 %v920_v25  ;;  %1587 = vmatmul.mubr.bf16.gmra.mrb[44].mxu1 %v1020_v34  ;;  %v1001_v5 = vmul.f32 %v1741_v3, %v2263_v27 }
 0x2df   :  { %v1745_v18 = vpop.eup %1744  ;;  %v999_v9 = vmul.f32 %v1743_v45, %v2260_v10 }
 0x2e0   :  { %v1747_v12 = vpop.eup %1746  ;;  %v1552_v17 = vpop.f32.mrb[60].mxu0  ;;  %v1002_v41 = vmul.f32 %v1745_v18, %v2266_v60 }
 0x2e1   :  { %v941_v6 = vadd.f32 1e-05, %v1552_v17  ;;  %v932_v14 = vpop.f32.mrb[61].mxu0  ;;  %v1000_v32 = vmul.f32 %v1747_v12, %v2269_v38 }
 0x2e2   :  { %v933_v39 = vadd.f32 1e-05, %v932_v14  ;;  %v1553_v43 = vpop.f32.mrb[62].mxu0  ;;  %v1022_v22 = vpack.c.bf16 %v1002_v41, %v1001_v5 }
 0x2e3   :  { %1756 = vrsqrt.f32 %v941_v6  ;;  %v944_v31 = vadd.f32 1e-05, %v1553_v43  ;;  %v935_v28 = vpop.f32.mrb[63].mxu0  ;;  %v1021_v55 = vpack.c.bf16 %v1000_v32, %v999_v9 }
 0x2e4   :  { %1758 = vrsqrt.f32 %v933_v39  ;;  %v936_v30 = vadd.f32 1e-05, %v935_v28 }
 0x2e5   :  { %v1749_v16 = vpop.eup %1748  ;;  %1760 = vrsqrt.f32 %v944_v31  ;;  %1590 = vmatprep.mubr.bf16.mxu1 %v1021_v55 }
 0x2e6   :  { %v1751_v27 = vpop.eup %1750  ;;  %1762 = vrsqrt.f32 %v936_v30  ;;  %1591 = vmatmul.mubr.bf16.gmra.mrb[48].mxu1 %v1022_v22  ;;  %v1005_v10 = vmul.f32 %v1749_v16, %v2283_v62 }
 0x2e7   :  { %v1753_v60 = vpop.eup %1752  ;;  %v1003_v26 = vmul.f32 %v1751_v27, %v2280_v42 }
 0x2e8   :  { %v1755_v53 = vpop.eup %1754  ;;  %v1006_v38 = vmul.f32 %v1753_v60, %v2286_v44 }
 0x2e9   :  { %v1004_v2 = vmul.f32 %v1755_v53, %v2289_v7  ;;  %v2363_v7 = vld [vmem:[%s2530_s5] ss:$0 sm:$0xff] }
 0x2ea   :  { %v1024_v24 = vpack.c.bf16 %v1006_v38, %v1005_v10 }
 0x2eb   :  { %v1023_v33 = vpack.c.bf16 %v1004_v2, %v1003_v26 }
 0x2ed   :  { %v1757_v61 = vpop.eup %1756  ;;  %1594 = vmatprep.mubr.bf16.mxu1 %v1023_v33 }
 0x2ee   :  { %v1759_v54 = vpop.eup %1758  ;;  %1595 = vmatmul.mubr.bf16.gmra.mrb[52].mxu1 %v1024_v24  ;;  %v1009_v50 = vmul.f32 %v1757_v61, %v2303_v52 }
 0x2ef   :  { %v1761_v59 = vpop.eup %1760  ;;  %v1007_v62 = vmul.f32 %v1759_v54, %v2300_v11 }
 0x2f0   :  { %v1763_v48 = vpop.eup %1762  ;;  %v1010_v63 = vmul.f32 %v1761_v59, %v2306_v21 }
 0x2f1   :  { %v1008_v44 = vmul.f32 %v1763_v48, %v2309_v57 }
 0x2f2   :  { %v1026_v37 = vpack.c.bf16 %v1010_v63, %v1009_v50 }
 0x2f3   :  { %v1025_v42 = vpack.c.bf16 %v1008_v44, %v1007_v62 }
 0x2f5   :  { %1598 = vmatprep.mubr.bf16.mxu1 %v1025_v42 }
 0x2f6   :  { %1599 = vmatmul.mubr.bf16.gmra.mrb[56].mxu1 %v1026_v37 }
 0x391   :  { %v1572_v40 = vpop.f32.mrb[64].mxu0 }
 0x392   :  { %v1141_v46 = vadd.f32 %v1572_v40, %v2363_v7  ;;  %v1132_v52 = vpop.f32.mrb[65].mxu0 }
 0x393   :  { %v1133_v21 = vadd.f32 %v2363_v7, %v1132_v52  ;;  %v1573_v23 = vpop.f32.mrb[66].mxu0 }
 0x394   :  { %1262 = vst.msk [vmem:[%s2531_s6 + $0x10] sm:$0xff] %vm1259_vm1, %v1141_v46  ;;  %v1144_v11 = vadd.f32 %v1573_v23, %v2363_v7  ;;  %v1135_v57 = vpop.f32.mrb[67].mxu0 }
 0x395   :  { %1260 = vst.msk [vmem:[%s2531_s6] sm:$0xff] %vm1259_vm1, %v1133_v21  ;;  %v1136_v35 = vadd.f32 %v2363_v7, %v1135_v57 }
 0x396   :  { %1263 = vst.msk [vmem:[%s2531_s6 + $0x18] sm:$0xff] %vm1259_vm1, %v1144_v11 }
 0x397   :  { %1261 = vst.msk [vmem:[%s2531_s6 + $0x8] sm:$0xff] %vm1259_vm1, %v1136_v35 }
 0x399   :  { %v1576_v0 = vpop.f32.mrb[32].mxu1 }
 0x39a   :  { %v1157_v1 = vadd.f32 %v1576_v0, %v2363_v7  ;;  %v1148_v58 = vpop.f32.mrb[33].mxu1 }
 0x39b   :  { %v1149_v36 = vadd.f32 %v2363_v7, %v1148_v58  ;;  %v1577_v47 = vpop.f32.mrb[34].mxu1 }
 0x39c   :  { %1266 = vst.msk [vmem:[%s2531_s6 + $0x30] sm:$0xff] %vm1259_vm1, %v1157_v1  ;;  %v1160_v51 = vadd.f32 %v1577_v47, %v2363_v7  ;;  %v1151_v15 = vpop.f32.mrb[35].mxu1 }
 0x39d   :  { %1264 = vst.msk [vmem:[%s2531_s6 + $0x20] sm:$0xff] %vm1259_vm1, %v1149_v36  ;;  %v1152_v49 = vadd.f32 %v2363_v7, %v1151_v15 }
 0x39e   :  { %1267 = vst.msk [vmem:[%s2531_s6 + $0x38] sm:$0xff] %vm1259_vm1, %v1160_v51 }
 0x39f   :  { %1265 = vst.msk [vmem:[%s2531_s6 + $0x28] sm:$0xff] %vm1259_vm1, %v1152_v49 }
 0x3a1   :  { %v1580_v19 = vpop.f32.mrb[36].mxu1 }
 0x3a2   :  { %v1173_v4 = vadd.f32 %v1580_v19, %v2363_v7  ;;  %v1164_v8 = vpop.f32.mrb[37].mxu1 }
 0x3a3   :  { %v1165_v13 = vadd.f32 %v2363_v7, %v1164_v8  ;;  %v1581_v34 = vpop.f32.mrb[38].mxu1 }
 0x3a4   :  { %1270 = vst.msk [vmem:[%s2531_s6 + $0x50] sm:$0xff] %vm1259_vm1, %v1173_v4  ;;  %v1176_v56 = vadd.f32 %v1581_v34, %v2363_v7  ;;  %v1167_v20 = vpop.f32.mrb[39].mxu1 }
 0x3a5   :  { %1268 = vst.msk [vmem:[%s2531_s6 + $0x40] sm:$0xff] %vm1259_vm1, %v1165_v13  ;;  %v1168_v29 = vadd.f32 %v2363_v7, %v1167_v20 }
 0x3a6   :  { %1271 = vst.msk [vmem:[%s2531_s6 + $0x58] sm:$0xff] %vm1259_vm1, %v1176_v56 }
 0x3a7   :  { %1269 = vst.msk [vmem:[%s2531_s6 + $0x48] sm:$0xff] %vm1259_vm1, %v1168_v29 }
 0x3a9   :  { %v1584_v25 = vpop.f32.mrb[40].mxu1 }
 0x3aa   :  { %v1189_v3 = vadd.f32 %v1584_v25, %v2363_v7  ;;  %v1180_v45 = vpop.f32.mrb[41].mxu1 }
 0x3ab   :  { %v1181_v18 = vadd.f32 %v2363_v7, %v1180_v45  ;;  %v1585_v12 = vpop.f32.mrb[42].mxu1 }
 0x3ac   :  { %1274 = vst.msk [vmem:[%s2531_s6 + $0x70] sm:$0xff] %vm1259_vm1, %v1189_v3  ;;  %v1192_v17 = vadd.f32 %v1585_v12, %v2363_v7  ;;  %v1183_v5 = vpop.f32.mrb[43].mxu1 }
 0x3ad   :  { %1272 = vst.msk [vmem:[%s2531_s6 + $0x60] sm:$0xff] %vm1259_vm1, %v1181_v18  ;;  %v1184_v41 = vadd.f32 %v2363_v7, %v1183_v5 }
 0x3ae   :  { %1275 = vst.msk [vmem:[%s2531_s6 + $0x78] sm:$0xff] %vm1259_vm1, %v1192_v17 }
 0x3af   :  { %1273 = vst.msk [vmem:[%s2531_s6 + $0x68] sm:$0xff] %vm1259_vm1, %v1184_v41 }
 0x3b1   :  { %v1588_v6 = vpop.f32.mrb[44].mxu1 }
 0x3b2   :  { %v1205_v14 = vadd.f32 %v1588_v6, %v2363_v7  ;;  %v1196_v9 = vpop.f32.mrb[45].mxu1 }
 0x3b3   :  { %v1197_v32 = vadd.f32 %v2363_v7, %v1196_v9  ;;  %v1589_v39 = vpop.f32.mrb[46].mxu1 }
 0x3b4   :  { %1278 = vst.msk [vmem:[%s2531_s6 + $0x90] sm:$0xff] %vm1259_vm1, %v1205_v14  ;;  %v1208_v43 = vadd.f32 %v1589_v39, %v2363_v7  ;;  %v1199_v22 = vpop.f32.mrb[47].mxu1 }
 0x3b5   :  { %1276 = vst.msk [vmem:[%s2531_s6 + $0x80] sm:$0xff] %vm1259_vm1, %v1197_v32  ;;  %v1200_v31 = vadd.f32 %v2363_v7, %v1199_v22 }
 0x3b6   :  { %1279 = vst.msk [vmem:[%s2531_s6 + $0x98] sm:$0xff] %vm1259_vm1, %v1208_v43 }
 0x3b7   :  { %1277 = vst.msk [vmem:[%s2531_s6 + $0x88] sm:$0xff] %vm1259_vm1, %v1200_v31 }
 0x3b9   :  { %v1592_v28 = vpop.f32.mrb[48].mxu1 }
 0x3ba   :  { %v1221_v55 = vadd.f32 %v1592_v28, %v2363_v7  ;;  %v1212_v30 = vpop.f32.mrb[49].mxu1 }
 0x3bb   :  { %v1213_v16 = vadd.f32 %v2363_v7, %v1212_v30  ;;  %v1593_v27 = vpop.f32.mrb[50].mxu1 }
 0x3bc   :  { %1282 = vst.msk [vmem:[%s2531_s6 + $0xb0] sm:$0xff] %vm1259_vm1, %v1221_v55  ;;  %v1224_v60 = vadd.f32 %v1593_v27, %v2363_v7  ;;  %v1215_v53 = vpop.f32.mrb[51].mxu1 }
 0x3bd   :  { %1280 = vst.msk [vmem:[%s2531_s6 + $0xa0] sm:$0xff] %vm1259_vm1, %v1213_v16  ;;  %v1216_v10 = vadd.f32 %v2363_v7, %v1215_v53 }
 0x3be   :  { %1283 = vst.msk [vmem:[%s2531_s6 + $0xb8] sm:$0xff] %vm1259_vm1, %v1224_v60 }
 0x3bf   :  { %1281 = vst.msk [vmem:[%s2531_s6 + $0xa8] sm:$0xff] %vm1259_vm1, %v1216_v10 }
 0x3c1   :  { %v1596_v38 = vpop.f32.mrb[52].mxu1 }
 0x3c2   :  { %v1237_v26 = vadd.f32 %v1596_v38, %v2363_v7  ;;  %v1228_v2 = vpop.f32.mrb[53].mxu1 }
 0x3c3   :  { %v1229_v24 = vadd.f32 %v2363_v7, %v1228_v2  ;;  %v1597_v33 = vpop.f32.mrb[54].mxu1 }
 0x3c4   :  { %1286 = vst.msk [vmem:[%s2531_s6 + $0xd0] sm:$0xff] %vm1259_vm1, %v1237_v26  ;;  %v1240_v61 = vadd.f32 %v1597_v33, %v2363_v7  ;;  %v1231_v54 = vpop.f32.mrb[55].mxu1 }
 0x3c5   :  { %1284 = vst.msk [vmem:[%s2531_s6 + $0xc0] sm:$0xff] %vm1259_vm1, %v1229_v24  ;;  %v1232_v59 = vadd.f32 %v2363_v7, %v1231_v54 }
 0x3c6   :  { %1287 = vst.msk [vmem:[%s2531_s6 + $0xd8] sm:$0xff] %vm1259_vm1, %v1240_v61 }
 0x3c7   :  { %1285 = vst.msk [vmem:[%s2531_s6 + $0xc8] sm:$0xff] %vm1259_vm1, %v1232_v59 }
 0x3c9   :  { %v1600_v48 = vpop.f32.mrb[56].mxu1 }
 0x3ca   :  { %v1253_v50 = vadd.f32 %v1600_v48, %v2363_v7  ;;  %v1244_v63 = vpop.f32.mrb[57].mxu1 }
 0x3cb   :  { %v1245_v62 = vadd.f32 %v2363_v7, %v1244_v63  ;;  %v1601_v44 = vpop.f32.mrb[58].mxu1 }
 0x3cc   :  { %1290 = vst.msk [vmem:[%s2531_s6 + $0xf0] sm:$0xff] %vm1259_vm1, %v1253_v50  ;;  %v1256_v37 = vadd.f32 %v1601_v44, %v2363_v7  ;;  %v1247_v42 = vpop.f32.mrb[59].mxu1 }
 0x3cd   :  { %1288 = vst.msk [vmem:[%s2531_s6 + $0xe0] sm:$0xff] %vm1259_vm1, %v1245_v62  ;;  %v1248_v40 = vadd.f32 %v2363_v7, %v1247_v42 }
 0x3ce   :  { %1291 = vst.msk [vmem:[%s2531_s6 + $0xf8] sm:$0xff] %vm1259_vm1, %v1256_v37 }
 0x3cf   :  { %1289 = vst.msk [vmem:[%s2531_s6 + $0xe8] sm:$0xff] %vm1259_vm1, %v1248_v40 }

</bundles_post_ra>
